<compile_context>
chip_gen: v5e
topology: v5e:2x2
jax: 0.10.0
libtpu: 0.0.40
codegen_flags: <defaults>
</compile_context>

<pallas_src>
import jax
import jax.numpy as jnp
from jax.experimental import pallas as pl
from jax.experimental.pallas import tpu as pltpu


_LEAKY_SLOPE = 0.01       # F.leaky_relu default negative_slope
_LANE = 128               # TPU lane width
_BATCH_BLOCK = 128        # batch tile for the gridded (large-batch) path


def _leaky_relu(x):
    return jnp.where(x >= 0, x, _LEAKY_SLOPE * x)


def _make_fused_encoder_kernel(n_hidden, non_linear):
    """Kernel computing the whole encoder forward for one batch tile.

    Ref order (inputs, then output):
      n_hidden >= 1: x, c, w1x, w1c, b1, (w_i, b_i) * (n_hidden-1),
                     w_head, b_head, out
      n_hidden == 0: x, c, wh_x, wh_c, b_head, out
    """

    def kernel(*refs):
        x = refs[0][...]
        c = refs[1][...]

        if n_hidden == 0:
            # Heads read the (x, c) concat directly -> split-head matmul.
            wh_x, wh_c, bh = refs[2], refs[3], refs[4]
            out_ref = refs[5]
            z = (jnp.dot(x, wh_x[...], preferred_element_type=jnp.float32)
                 + jnp.dot(c, wh_c[...], preferred_element_type=jnp.float32)
                 + bh[...])
            out_ref[...] = z.astype(out_ref.dtype)
            return

        # First hidden layer with concat(x, c) fused into two MXU pushes.
        w1x, w1c, b1 = refs[2], refs[3], refs[4]
        h = (jnp.dot(x, w1x[...], preferred_element_type=jnp.float32)
             + jnp.dot(c, w1c[...], preferred_element_type=jnp.float32)
             + b1[...])
        if non_linear:
            h = _leaky_relu(h)

        # Remaining hidden layers (unrolled; activations never leave VMEM).
        idx = 5
        for _ in range(n_hidden - 1):
            w_ref, b_ref = refs[idx], refs[idx + 1]
            idx += 2
            h = (jnp.dot(h.astype(w_ref.dtype), w_ref[...],
                         preferred_element_type=jnp.float32)
                 + b_ref[...])
            if non_linear:
                h = _leaky_relu(h)

        # Fused mu|logvar head: one matmul, one lane-dense store.
        w_head, b_head = refs[idx], refs[idx + 1]
        out_ref = refs[idx + 2]
        z = (jnp.dot(h.astype(w_head.dtype), w_head[...],
                     preferred_element_type=jnp.float32)
             + b_head[...])
        out_ref[...] = z.astype(out_ref.dtype)

    return kernel


class EncoderPallas:
    def __init__(self, input_dim, hidden_dim, c_dim, non_linear=False, key=None):
        self.input_dim = input_dim
        self.hidden_dims = list(hidden_dim)
        self.z_dim = self.hidden_dims[-1]
        self.c_dim = c_dim
        self.non_linear = non_linear
        self.layer_sizes = [input_dim + c_dim] + self.hidden_dims

        if key is None:
            key = jax.random.PRNGKey(42)

        def init_linear(k, din, dout):
            kw, kb = jax.random.split(k)
            bound = 1.0 / (din ** 0.5)
            w = jax.random.uniform(kw, (din, dout), jnp.float32, -bound, bound)
            b = jax.random.uniform(kb, (dout,), jnp.float32, -bound, bound)
            return w, b

        dims = list(zip(self.layer_sizes[:-1], self.layer_sizes[1:]))
        keys = jax.random.split(key, len(dims) + 1)

        # Hidden Linear layers: all (din, dout) pairs except the last.
        self.encoder_params = [init_linear(keys[i], din, dout)
                               for i, (din, dout) in enumerate(dims[:-1])]

        # mu / logvar heads: layer_sizes[-2] -> layer_sizes[-1]
        din_last, dout_last = dims[-1]
        k_mu, k_lv = jax.random.split(keys[-1])
        self.mu_params = init_linear(k_mu, din_last, dout_last)
        self.lv_params = init_linear(k_lv, din_last, dout_last)

        self.n_hidden = len(self.encoder_params)
        self._build_fused_params()
        self._kernel = _make_fused_encoder_kernel(self.n_hidden, self.non_linear)

    def _build_fused_params(self):
        """Reorganize params for the fused kernel (done once, not per call)."""
        wmu, bmu = self.mu_params
        wlv, blv = self.lv_params
        w_head = jnp.concatenate([wmu, wlv], axis=1)          # (Din, 2*Dz)
        b_head = jnp.concatenate([bmu, blv]).reshape(1, -1)   # (1, 2*Dz)
        # Zero-pad the head output dim to a lane multiple -> unmasked store.
        pad = (-w_head.shape[1]) % _LANE
        if pad:
            w_head = jnp.pad(w_head, ((0, 0), (0, pad)))
            b_head = jnp.pad(b_head, ((0, 0), (0, pad)))
        self.head_out_dim = w_head.shape[1]

        params = []
        if self.n_hidden >= 1:
            w1, b1 = self.encoder_params[0]
            params += [w1[: self.input_dim], w1[self.input_dim:],
                       b1.reshape(1, -1)]
            for (w, b) in self.encoder_params[1:]:
                params += [w, b.reshape(1, -1)]
            params += [w_head, b_head]
        else:
            # No hidden layers: the (split) head consumes x and c directly.
            params += [w_head[: self.input_dim], w_head[self.input_dim:],
                       b_head]
        self._fused_params = [jnp.asarray(p) for p in params]

    def __call__(self, x, c):
        c = c.reshape(-1, self.c_dim)
        B = x.shape[0]
        inputs = (x, c) + tuple(self._fused_params)
        out_shape = jax.ShapeDtypeStruct((B, self.head_out_dim), x.dtype)

        if B >= 2 * _BATCH_BLOCK and B % _BATCH_BLOCK == 0:
            # Large batch: grid over batch; weights stay resident (block (0,0)),
            # batch axis marked parallel so v7x's two TCs split the work.
            bm = _BATCH_BLOCK
            in_specs = [
                pl.BlockSpec((bm, self.input_dim), lambda i: (i, 0)),
                pl.BlockSpec((bm, self.c_dim), lambda i: (i, 0)),
            ]
            in_specs += [pl.BlockSpec(p.shape, lambda i: (0, 0))
                         for p in self._fused_params]
            out = pl.pallas_call(
                self._kernel,
                out_shape=out_shape,
                grid=(B // bm,),
                in_specs=in_specs,
                out_specs=pl.BlockSpec((bm, self.head_out_dim),
                                       lambda i: (i, 0)),
                compiler_params=pltpu.CompilerParams(
                    dimension_semantics=("parallel",)),
            )(*inputs)
        else:
            # Small batch: single invocation, everything resident in VMEM
            # (no grid => no useless double-buffering of the tiny weights).
            vmem = pl.BlockSpec(memory_space=pltpu.MemorySpace.VMEM)
            out = pl.pallas_call(
                self._kernel,
                out_shape=out_shape,
                in_specs=[vmem] * len(inputs),
                out_specs=pl.BlockSpec(memory_space=pltpu.MemorySpace.VMEM),
            )(*inputs)

        mu = out[:, : self.z_dim]
        logvar = out[:, self.z_dim: 2 * self.z_dim]
        return mu, logvar


# ---------------------------------------------------------------------------
# Plain-JAX reference for correctness checks
# ---------------------------------------------------------------------------

def encoder_ref(enc, x, c):
    c = c.reshape(-1, enc.c_dim)
    h = jnp.concatenate((x, c), axis=1)
    for (w, b) in enc.encoder_params:
        h = h @ w + b
        if enc.non_linear:
            h = jnp.where(h >= 0, h, _LEAKY_SLOPE * h)
    wmu, bmu = enc.mu_params
    wlv, blv = enc.lv_params
    return h @ wmu + bmu, h @ wlv + blv


if __name__ == "__main__":
    key = jax.random.PRNGKey(0)
    kx, kc, kp, kx2, kc2, kp2 = jax.random.split(key, 6)

    # --- Case 1: small batch, one hidden layer, leaky_relu (no-grid path) ---
    batch, input_dim, c_dim = 8, 32, 4
    hidden_dim = [32, 16]           # layer_sizes = [36, 32, 16]
    x = jax.random.normal(kx, (batch, input_dim), jnp.float32)
    c = jax.random.normal(kc, (batch, c_dim), jnp.float32)
    enc = EncoderPallas(input_dim, hidden_dim, c_dim, non_linear=True, key=kp)

    mu, logvar = jax.block_until_ready(enc(x, c))
    mu_ref, lv_ref = encoder_ref(enc, x, c)
    assert mu.shape == (batch, hidden_dim[-1])
    assert logvar.shape == (batch, hidden_dim[-1])
    assert jnp.allclose(mu, mu_ref, atol=1e-4, rtol=1e-4)
    assert jnp.allclose(logvar, lv_ref, atol=1e-4, rtol=1e-4)

    # --- Case 2: large batch -> gridded path (batch sharded across cores) ---
    xb = jax.random.normal(kx2, (256, input_dim), jnp.float32)
    cb = jax.random.normal(kc2, (256, c_dim), jnp.float32)
    mu_b, lv_b = jax.block_until_ready(enc(xb, cb))
    mu_b_ref, lv_b_ref = encoder_ref(enc, xb, cb)
    assert mu_b.shape == (256, hidden_dim[-1])
    assert jnp.allclose(mu_b, mu_b_ref, atol=1e-4, rtol=1e-4)
    assert jnp.allclose(lv_b, lv_b_ref, atol=1e-4, rtol=1e-4)

    # --- Case 3: no hidden linear layers (hidden_dim of length 1) ----------
    enc0 = EncoderPallas(input_dim, [16], c_dim, non_linear=False, key=kp2)
    mu0, lv0 = jax.block_until_ready(enc0(x, c))
    mu0_ref, lv0_ref = encoder_ref(enc0, x, c)
    assert jnp.allclose(mu0, mu0_ref, atol=1e-4, rtol=1e-4)
    assert jnp.allclose(lv0, lv0_ref, atol=1e-4, rtol=1e-4)

    print("KERNEL_OK")
</pallas_src>

<mosaic_0001>
module attributes {stable_mosaic.version = 11 : i64} {
  func.func @kernel(%arg0: memref<8x32xf32, #tpu.memory_space<vmem>>, %arg1: memref<8x4xf32, #tpu.memory_space<vmem>>, %arg2: memref<32x32xf32, #tpu.memory_space<vmem>>, %arg3: memref<4x32xf32, #tpu.memory_space<vmem>>, %arg4: memref<1x32xf32, #tpu.memory_space<vmem>>, %arg5: memref<32x128xf32, #tpu.memory_space<vmem>>, %arg6: memref<1x128xf32, #tpu.memory_space<vmem>>, %arg7: memref<8x128xf32, #tpu.memory_space<vmem>>) attributes {dimension_semantics = [], scalar_prefetch = 0 : i64, scratch_operands = 0 : i64, tpu.core_type = #tpu.core_type<tc>} {
    %c0 = arith.constant 0 : index
    %c0_0 = arith.constant 0 : index
    %0 = vector.load %arg0[%c0, %c0_0] : memref<8x32xf32, #tpu.memory_space<vmem>>, vector<8x32xf32>
    %c0_1 = arith.constant 0 : index
    %c0_2 = arith.constant 0 : index
    %1 = vector.load %arg1[%c0_1, %c0_2] : memref<8x4xf32, #tpu.memory_space<vmem>>, vector<8x4xf32>
    %c0_3 = arith.constant 0 : index
    %c0_4 = arith.constant 0 : index
    %2 = vector.load %arg2[%c0_3, %c0_4] : memref<32x32xf32, #tpu.memory_space<vmem>>, vector<32x32xf32>
    %cst = arith.constant dense<0.000000e+00> : vector<8x32xf32>
    %3 = tpu.matmul %0, %2, %cst {dimension_numbers = #tpu.dot_dimension_numbers<[1], [0], [0], [1], [0, 0, 1, 1], [], []>} : vector<8x32xf32>, vector<32x32xf32>, vector<8x32xf32> -> vector<8x32xf32>
    %c0_5 = arith.constant 0 : index
    %c0_6 = arith.constant 0 : index
    %4 = vector.load %arg3[%c0_5, %c0_6] : memref<4x32xf32, #tpu.memory_space<vmem>>, vector<4x32xf32>
    %cst_7 = arith.constant dense<0.000000e+00> : vector<8x32xf32>
    %5 = tpu.matmul %1, %4, %cst_7 {dimension_numbers = #tpu.dot_dimension_numbers<[1], [0], [0], [1], [0, 0, 1, 1], [], []>} : vector<8x4xf32>, vector<4x32xf32>, vector<8x32xf32> -> vector<8x32xf32>
    %6 = arith.addf %3, %5 : vector<8x32xf32>
    %c0_8 = arith.constant 0 : index
    %c0_9 = arith.constant 0 : index
    %7 = vector.load %arg4[%c0_8, %c0_9] : memref<1x32xf32, #tpu.memory_space<vmem>>, vector<1x32xf32>
    %8 = vector.broadcast %7 : vector<1x32xf32> to vector<8x32xf32>
    %9 = arith.addf %6, %8 : vector<8x32xf32>
    %cst_10 = arith.constant 0.000000e+00 : f32
    %10 = vector.broadcast %cst_10 : f32 to vector<8x32xf32>
    %11 = arith.cmpf oge, %9, %10 : vector<8x32xf32>
    %cst_11 = arith.constant 0.00999999977 : f32
    %12 = vector.broadcast %cst_11 : f32 to vector<8x32xf32>
    %13 = arith.mulf %12, %9 : vector<8x32xf32>
    %14 = arith.select %11, %9, %13 : vector<8x32xi1>, vector<8x32xf32>
    %c0_12 = arith.constant 0 : index
    %c0_13 = arith.constant 0 : index
    %15 = vector.load %arg5[%c0_12, %c0_13] : memref<32x128xf32, #tpu.memory_space<vmem>>, vector<32x128xf32>
    %cst_14 = arith.constant dense<0.000000e+00> : vector<8x128xf32>
    %16 = tpu.matmul %14, %15, %cst_14 {dimension_numbers = #tpu.dot_dimension_numbers<[1], [0], [0], [1], [0, 0, 1, 1], [], []>} : vector<8x32xf32>, vector<32x128xf32>, vector<8x128xf32> -> vector<8x128xf32>
    %c0_15 = arith.constant 0 : index
    %c0_16 = arith.constant 0 : index
    %17 = vector.load %arg6[%c0_15, %c0_16] : memref<1x128xf32, #tpu.memory_space<vmem>>, vector<1x128xf32>
    %18 = vector.broadcast %17 : vector<1x128xf32> to vector<8x128xf32>
    %19 = arith.addf %16, %18 : vector<8x128xf32>
    %c0_17 = arith.constant 0 : index
    %c0_18 = arith.constant 0 : index
    %20 = vector.load %arg7[%c0_17, %c0_18] : memref<8x128xf32, #tpu.memory_space<vmem>>, vector<8x128xf32>
    tpu.vector_store %arg7[%c0_17, %c0_18], %19 {strides = array<i32>} : memref<8x128xf32, #tpu.memory_space<vmem>>, vector<8x128xf32>,
    return
  }
}

</mosaic_0001>

<bundles_post_ra>
// kernel: tpu_custom_call.1
= control target key start
LH: loop header
LB: loop body
LE: loop exit
PB: predicated region body
PF: predicated region fallthrough
CT: control target
= control target key end

     0   :  { %12 = vsyncpa [#allocation3], 0  ;;  %s336_s0 = inlined_call_operand.vmem [shape: f32[8,32], index: 0, kind: input, shape index: {}]   ;;  %s337_s1 = inlined_call_operand.vmem [shape: f32[8,4], index: 1, kind: input, shape index: {}]   ;;  %s338_s2 = inlined_call_operand.hbm [shape: f32[32,32], index: 2, kind: input, shape index: {}]   ;;  %s339_s3 = inlined_call_operand.vmem [shape: f32[4,32], index: 3, kind: input, shape index: {}]   ;;  %s340_s4 = inlined_call_operand.vmem [shape: f32[1,32], index: 4, kind: input, shape index: {}]   ;;  %s341_s5 = inlined_call_operand.hbm [shape: f32[32,128], index: 5, kind: input, shape index: {}]   ;;  %s342_s6 = inlined_call_operand.vmem [shape: f32[1,128], index: 6, kind: input, shape index: {}]   ;;  %s343_s7 = inlined_call_operand.hbm [shape: f32[8,128], index: 7, kind: output, shape index: {}]  }
   0x1   :  { %13 = vsyncpa [#allocation6], 0 }
   0x2   :  { %14 = vsyncpa [#allocation4], 0  ;;  %s23_s26 = sshll.u32 %s338_s2, 4  ;;  %s265_s27 = smov [#allocation2]   ;;  %s24_s26 = int_to_ptr.hbm [resolvable:$true] %s23_s26 }
   0x3   :  { %s25_s28 = sshll.u32 %s265_s27, 4  ;;  %s40_s8 = sshll.u32 %s341_s5, 4  ;;  %s26_s28 = int_to_ptr.vmem [resolvable:$true] %s25_s28  ;;  %s41_s8 = int_to_ptr.hbm [resolvable:$true] %s40_s8 }
   0x4   :  { %s266_s9 = smov 128   ;;  %s267_s10 = smov 8  }
   0x5   :  { %31 = dma.hbm_to_vmem [thread:$0]  %s24_s26, 512, %s26_s28, [#allocation3], %s266_s9, %s266_s9, %s267_s10  }
   0x6   :  { %s268_s11 = smov [#allocation5]  }
   0x7   :  { %s42_s12 = sshll.u32 %s268_s11, 4  ;;  %s43_s12 = int_to_ptr.vmem [resolvable:$true] %s42_s12 }
   0x8   :  { %48 = dma.hbm_to_vmem [thread:$0]  %s41_s8, 512, %s43_s12, [#allocation6], %s266_s9, %s266_s9, %s267_s10  }
   0x9   :  { %259 = dma.done.wait [#allocation3], 512  }
   0xa   :  { %260 = vsyncadd [#allocation3], 4294966784 }
   0xb   :  { %261 = dma.done.wait [#allocation6], 512  }
   0xc   :  { %262 = vsyncadd [#allocation6], 4294966784  ;;  %vm70_vm0 = vcmask 1043456   ;;  %v64_v0 = vld [vmem:[#allocation2 + $0x18] sm:$0xff]  ;;  %v63_v1 = vld [vmem:[#allocation2 + $0x10] sm:$0xff]  ;;  %vm66_vm1 = vcmask 31744  }
   0xd   :  { %110 = vmatpush.msra.mxu1 %v64_v0  ;;  %v65_v2 = vld [vmem:[%s339_s3] sm:$0xf]  ;;  %v62_v4 = vld [vmem:[#allocation2 + $0x8] sm:$0xff]  ;;  %vm94_vm2 = vcmask 261120   ;;  %v129_v7 = vld [vmem:[#allocation5 + $0x18] sm:$0xff]  ;;  %s269_s18 = smov [#allocation7]  }
   0xe   :  { %v60_v3 = vld [vmem:[%s337_s1] sm:$0xff]  ;;  %176 = vmatpush.msk.msra.mxu0 %vm70_vm0, %v65_v2  ;;  %149 = vmatpush.msra.mxu2 %v129_v7  ;;  %v128_v8 = vld [vmem:[#allocation5 + $0x10] sm:$0xff]  ;;  %v127_v9 = vld [vmem:[#allocation5 + $0x8] sm:$0xff]  ;;  %s163_s19 = sshll.u32 %s269_s18, 4  ;;  %s165_s22 = sshll.u32 %s343_s7, 4  ;;  %s164_s19 = int_to_ptr.vmem [resolvable:$true] %s163_s19  ;;  %s166_s22 = int_to_ptr.hbm [resolvable:$true] %s165_s22 }
   0xf   :  { %111 = vmatpush.msra.mxu1 %v63_v1  ;;  %177 = vmatmul.msk.f32.vlgmr.msra.gmra.mxu0 %vm66_vm1, %v60_v3  ;;  %v61_v5 = vld [vmem:[#allocation2] sm:$0xff] }
  0x10   :  { %v59_v6 = vld [vmem:[%s336_s0] sm:$0xff]  ;;  %150 = vmatpush.msra.mxu2 %v128_v8 }
  0x11   :  { %112 = vmatpush.msra.mxu1 %v62_v4  ;;  %v126_v10 = vld [vmem:[#allocation5] sm:$0xff] }
  0x12   :  { %151 = vmatpush.msra.mxu2 %v127_v9  ;;  %v185_v12 = vld [vmem:[%s340_s4] ss:$0 sm:$0xff] }
  0x13   :  { %113 = vmatpush.msra.mxu1 %v61_v5  ;;  %v186_v18 = vld [vmem:[%s342_s6] ss:$0 sm:$0xff] }
  0x14   :  { %178 = vmatmul.msk.f32.vlgmr.msra.gmra.mxu1 %vm94_vm2, %v59_v6  ;;  %152 = vmatpush.msra.mxu2 %v126_v10 }
  0x8c   :  { %v91_v11 = vpop.f32.mrf.mxu0 }
  0x91   :  { %v115_v13 = vpop.f32.mrf.mxu1 }
  0x92   :  { %v116_v14 = vadd.f32 %v115_v13, %v91_v11 }
  0x94   :  { %v122_v15 = vadd.f32 %v185_v12, %v116_v14 }
  0x96   :  { %vm123_vm3 = vcmp.ge.f32.partialorder %v122_v15, 0.0  ;;  %v124_v16 = vmul.f32 0.01, %v122_v15 }
  0x98   :  { %v125_v17 = vsel %vm123_vm3, %v122_v15, %v124_v16 }
  0x99   :  { %179 = vmatmul.msk.f32.vlgmr.msra.gmra.mxu2 %vm94_vm2, %v125_v17 }
 0x11c   :  { %v154_v19 = vpop.f32.mrf.mxu2 }
 0x11d   :  { %v155_v20 = vadd.f32 %v186_v18, %v154_v19 }
 0x11f   :  { %157 = vst [vmem:[#allocation7] sm:$0xff] %v155_v20 }
 0x120   :  { %168 = dma.vmem_to_hbm [thread:$0]  %s164_s19, 128, %s166_s22, [#allocation4]  }
 0x121   :  { %263 = dma.done.wait [#allocation4], 128  }
 0x122   :  { %264 = vsyncadd [#allocation4], 4294967168 }
 0x123   :  { %173 = vsyncpa [#allocation3], 1 }
 0x124   :  { %174 = vsyncpa [#allocation6], 1 }
 0x125   :  { %175 = vsyncpa [#allocation4], 1 }

</bundles_post_ra>
